<compile_context>
chip_gen: v5e
topology: v5e:2x2
jax: 0.10.0
libtpu: 0.0.40
codegen_flags: <defaults>
</compile_context>

<pallas_src>
import math

import jax
import jax.numpy as jnp
from jax.experimental import pallas as pl
from jax.experimental.pallas import tpu as pltpu


def _round_up(x, m):
    return ((x + m - 1) // m) * m


def _token_embedding_kernel(x_ref, w_ref, o_ref):
    # x_ref: (1, L+2, C)   circular-halo slab for one batch element
    # w_ref: (3, C, TD)    weight taps for this D tile (VMEM resident slab)
    # o_ref: (1, L, TD)    lane-dense output block
    L = o_ref.shape[1]
    acc = jnp.dot(x_ref[0, pl.ds(0, L), :], w_ref[0],
                  preferred_element_type=jnp.float32)        # x_{l-1} @ W[:,:,0]
    acc = acc + jnp.dot(x_ref[0, pl.ds(1, L), :], w_ref[1],
                        preferred_element_type=jnp.float32)  # x_{l}   @ W[:,:,1]
    acc = acc + jnp.dot(x_ref[0, pl.ds(2, L), :], w_ref[2],
                        preferred_element_type=jnp.float32)  # x_{l+1} @ W[:,:,2]
    o_ref[0] = acc.astype(o_ref.dtype)


def _pick_tile_d(L, C, Dp, in_itemsize, out_itemsize, budget_bytes=5 << 20):
    """Largest multiple-of-128 divisor of Dp whose per-buffer footprint fits
    `budget_bytes` (double-buffered total ~2x that -> fits v5e's 16 MiB scoped
    VMEM default and v7x's 64 MiB physical VMEM)."""
    q = Dp // 128
    best = 128
    for d in range(1, q + 1):
        if q % d:
            continue
        td = 128 * d
        per_buf = ((L + 2) * C * in_itemsize
                   + 3 * C * td * in_itemsize
                   + L * td * out_itemsize)
        if per_buf <= budget_bytes:
            best = td
    return best


def token_embedding(x, conv_weight, *, tile_d=None,
                    compute_dtype=jnp.bfloat16, out_dtype=jnp.float32):
    """TokenEmbedding forward (circular Conv1d, kernel_size=3, padding=1, no bias).

    x:           (B, L, C_in)        -- the PyTorch forward's input layout
                                        (permute/transpose fused away).
    conv_weight: (D_model, C_in, 3)  -- PyTorch Conv1d weight layout.
    returns:     (B, L, D_model) in out_dtype.
    """
    B, L, C = x.shape
    D = conv_weight.shape[0]
    assert conv_weight.shape == (D, C, 3)

    Dp = _round_up(max(D, 1), 128)                      # lane-dense output stores
    in_item = jnp.dtype(compute_dtype).itemsize
    out_item = jnp.dtype(out_dtype).itemsize
    if tile_d is None:
        tile_d = _pick_tile_d(L, C, Dp, in_item, out_item)
    nd = Dp // tile_d

    # --- circular halo: xh[b, l', :] = x[b, (l' - 1) mod L, :] --------------
    # (tiny copy; keeps circular wrap exact and lets the kernel take the three
    #  taps as plain shifted slices — no rolls, no 3x operand materialization)
    xh = jnp.concatenate([x[:, L - 1:L, :], x, x[:, 0:1, :]], axis=1)
    xh = xh.astype(compute_dtype)                       # (B, L+2, C)

    # --- weight (D, C, 3) -> (3, C, Dp); tap t multiplies x_{l+t-1} ---------
    # (matches PyTorch cross-correlation + circular padding semantics)
    w = jnp.transpose(conv_weight, (2, 1, 0))           # (3, C, D)
    if Dp != D:
        w = jnp.pad(w, ((0, 0), (0, 0), (0, Dp - D)))
    w = w.astype(compute_dtype)

    grid = (nd, B)   # D-tile axis outermost so each weight slab is reused
                     # across all B inner steps before it changes.

    cost = pl.CostEstimate(
        flops=2 * B * L * (3 * C) * Dp,
        transcendentals=0,
        bytes_accessed=(xh.size * in_item + w.size * in_item
                        + B * L * Dp * out_item),
    )

    out = pl.pallas_call(
        _token_embedding_kernel,
        out_shape=jax.ShapeDtypeStruct((B, L, Dp), out_dtype),
        grid_spec=pltpu.PrefetchScalarGridSpec(
            num_scalar_prefetch=0,
            grid=grid,
            in_specs=[
                # halo slab for batch b; full (L+2, C) in the last two dims.
                pl.BlockSpec((1, L + 2, C), lambda j, b: (b, 0, 0)),
                # weight slab for D tile j; constant across the inner b axis.
                pl.BlockSpec((3, C, tile_d), lambda j, b: (0, 0, j)),
            ],
            out_specs=pl.BlockSpec((1, L, tile_d), lambda j, b: (b, 0, j)),
        ),
        compiler_params=pltpu.CompilerParams(
            dimension_semantics=("parallel", "parallel"),
        ),
        cost_estimate=cost,
    )(xh, w)

    if Dp != D:
        out = out[:, :, :D]
    return out


def token_embedding_ref(x, conv_weight):
    """Independent reference: circular Conv1d via lax.conv_general_dilated."""
    x_ncl = jnp.transpose(x, (0, 2, 1))                              # (B, C, L)
    x_pad = jnp.pad(x_ncl, ((0, 0), (0, 0), (1, 1)), mode="wrap")    # circular
    y = jax.lax.conv_general_dilated(
        x_pad, conv_weight, window_strides=(1,), padding="VALID",
        dimension_numbers=("NCH", "OIH", "NCH"),
        precision=jax.lax.Precision.HIGHEST)
    return jnp.transpose(y, (0, 2, 1))                               # (B, L, D)


if __name__ == "__main__":
    B, L = 2, 8            # batch, sequence length
    C_IN, D_MODEL = 4, 32  # channels_in, dimension_model

    key = jax.random.PRNGKey(0)
    kx, kw = jax.random.split(key)

    x = jax.random.normal(kx, (B, L, C_IN), dtype=jnp.float32)

    # Deterministic Kaiming-normal init (fan_in = C_IN * kernel_size), Conv1d
    # weight shape (D_MODEL, C_IN, 3), no bias.
    fan_in = C_IN * 3
    std = math.sqrt(2.0 / fan_in)
    conv_weight = std * jax.random.normal(kw, (D_MODEL, C_IN, 3), dtype=jnp.float32)

    ref = token_embedding_ref(x, conv_weight)

    # f32 operand path: bit-tight check of the kernel math.
    out_f32 = jax.block_until_ready(
        token_embedding(x, conv_weight, compute_dtype=jnp.float32))
    assert out_f32.shape == (B, L, D_MODEL)
    assert jnp.allclose(out_f32, ref, atol=1e-5, rtol=1e-5), \
        "f32 mismatch vs conv reference"

    # Default bf16-operand path (mem-bound win; f32 accumulation on the MXU).
    out_bf16 = jax.block_until_ready(token_embedding(x, conv_weight))
    assert out_bf16.shape == (B, L, D_MODEL)
    assert jnp.allclose(out_bf16, ref, atol=5e-2, rtol=5e-2), \
        "bf16 mismatch vs conv reference"

    print("KERNEL_OK")
</pallas_src>

<mosaic_0001>
module attributes {stable_mosaic.version = 11 : i64} {
  func.func @_token_embedding_kernel(%arg0: i32, %arg1: i32, %arg2: memref<1x10x4xf32, #tpu.memory_space<vmem>>, %arg3: memref<3x4x128xf32, #tpu.memory_space<vmem>>, %arg4: memref<1x8x128xf32, #tpu.memory_space<vmem>>) attributes {dimension_semantics = [#tpu.dimension_semantics<parallel>, #tpu.dimension_semantics<parallel>], iteration_bounds = array<i64: 1, 2>, scalar_prefetch = 0 : i64, scratch_operands = 0 : i64, tpu.core_type = #tpu.core_type<tc>, window_params = [{transform_indices = @transform_0, window_bounds = array<i64: 1, 10, 4>}, {transform_indices = @transform_1, window_bounds = array<i64: 3, 4, 128>}, {transform_indices = @transform_2, window_bounds = array<i64: 1, 8, 128>}]} {
    %c0 = arith.constant 0 : index
    %c0_0 = arith.constant 0 : index
    %c0_1 = arith.constant 0 : index
    %0 = vector.load %arg2[%c0, %c0_0, %c0_1] : memref<1x10x4xf32, #tpu.memory_space<vmem>>, vector<1x8x4xf32>
    %1 = vector.shape_cast %0 : vector<1x8x4xf32> to vector<8x4xf32>
    %c0_2 = arith.constant 0 : index
    %c0_3 = arith.constant 0 : index
    %c0_4 = arith.constant 0 : index
    %2 = vector.load %arg3[%c0_2, %c0_3, %c0_4] : memref<3x4x128xf32, #tpu.memory_space<vmem>>, vector<1x4x128xf32>
    %3 = vector.shape_cast %2 : vector<1x4x128xf32> to vector<4x128xf32>
    %cst = arith.constant dense<0.000000e+00> : vector<8x128xf32>
    %4 = tpu.matmul %1, %3, %cst {dimension_numbers = #tpu.dot_dimension_numbers<[1], [0], [0], [1], [0, 0, 1, 1], [], []>} : vector<8x4xf32>, vector<4x128xf32>, vector<8x128xf32> -> vector<8x128xf32>
    %c0_5 = arith.constant 0 : index
    %c1 = arith.constant 1 : index
    %c0_6 = arith.constant 0 : index
    %5 = vector.load %arg2[%c0_5, %c1, %c0_6] : memref<1x10x4xf32, #tpu.memory_space<vmem>>, vector<1x8x4xf32>
    %6 = vector.shape_cast %5 : vector<1x8x4xf32> to vector<8x4xf32>
    %c1_7 = arith.constant 1 : index
    %c0_8 = arith.constant 0 : index
    %c0_9 = arith.constant 0 : index
    %7 = vector.load %arg3[%c1_7, %c0_8, %c0_9] : memref<3x4x128xf32, #tpu.memory_space<vmem>>, vector<1x4x128xf32>
    %8 = vector.shape_cast %7 : vector<1x4x128xf32> to vector<4x128xf32>
    %cst_10 = arith.constant dense<0.000000e+00> : vector<8x128xf32>
    %9 = tpu.matmul %6, %8, %cst_10 {dimension_numbers = #tpu.dot_dimension_numbers<[1], [0], [0], [1], [0, 0, 1, 1], [], []>} : vector<8x4xf32>, vector<4x128xf32>, vector<8x128xf32> -> vector<8x128xf32>
    %10 = arith.addf %4, %9 : vector<8x128xf32>
    %c0_11 = arith.constant 0 : index
    %c2 = arith.constant 2 : index
    %c0_12 = arith.constant 0 : index
    %11 = vector.load %arg2[%c0_11, %c2, %c0_12] : memref<1x10x4xf32, #tpu.memory_space<vmem>>, vector<1x8x4xf32>
    %12 = vector.shape_cast %11 : vector<1x8x4xf32> to vector<8x4xf32>
    %c2_13 = arith.constant 2 : index
    %c0_14 = arith.constant 0 : index
    %c0_15 = arith.constant 0 : index
    %13 = vector.load %arg3[%c2_13, %c0_14, %c0_15] : memref<3x4x128xf32, #tpu.memory_space<vmem>>, vector<1x4x128xf32>
    %14 = vector.shape_cast %13 : vector<1x4x128xf32> to vector<4x128xf32>
    %cst_16 = arith.constant dense<0.000000e+00> : vector<8x128xf32>
    %15 = tpu.matmul %12, %14, %cst_16 {dimension_numbers = #tpu.dot_dimension_numbers<[1], [0], [0], [1], [0, 0, 1, 1], [], []>} : vector<8x4xf32>, vector<4x128xf32>, vector<8x128xf32> -> vector<8x128xf32>
    %16 = arith.addf %10, %15 : vector<8x128xf32>
    %c0_17 = arith.constant 0 : index
    %c0_18 = arith.constant 0 : index
    %c0_19 = arith.constant 0 : index
    %17 = vector.load %arg4[%c0_17, %c0_18, %c0_19] : memref<1x8x128xf32, #tpu.memory_space<vmem>>, vector<1x8x128xf32>
    %18 = vector.shape_cast %17 : vector<1x8x128xf32> to vector<8x128xf32>
    %19 = vector.shape_cast %16 : vector<8x128xf32> to vector<1x8x128xf32>
    tpu.vector_store %arg4[%c0_17, %c0_18, %c0_19], %19 {strides = array<i32>} : memref<1x8x128xf32, #tpu.memory_space<vmem>>, vector<1x8x128xf32>,
    return
  }
  func.func @transform_0(%arg0: i32, %arg1: i32) -> (i32, i32, i32) {
    %c0_i32 = arith.constant 0 : i32
    %c0_i32_0 = arith.constant 0 : i32
    %c0_i32_1 = arith.constant 0 : i32
    return %arg1, %c0_i32, %c0_i32_0 : i32, i32, i32
  }
  func.func @transform_1(%arg0: i32, %arg1: i32) -> (i32, i32, i32) {
    %c0_i32 = arith.constant 0 : i32
    %c0_i32_0 = arith.constant 0 : i32
    %c0_i32_1 = arith.constant 0 : i32
    return %c0_i32, %c0_i32_0, %arg0 : i32, i32, i32
  }
  func.func @transform_2(%arg0: i32, %arg1: i32) -> (i32, i32, i32) {
    %c0_i32 = arith.constant 0 : i32
    %c0_i32_0 = arith.constant 0 : i32
    return %arg1, %c0_i32, %arg0 : i32, i32, i32
  }
}

</mosaic_0001>

<bundles_post_ra>
// kernel: tpu_custom_call.1
= control target key start
LH: loop header
LB: loop body
LE: loop exit
PB: predicated region body
PF: predicated region fallthrough
CT: control target
= control target key end

     0   :  { %7 = vsyncpa [#allocation3], 0  ;;  %s641_s0 = inlined_call_operand.vmem [shape: f32[2,10,4], index: 0, kind: input, shape index: {}]   ;;  %s642_s1 = inlined_call_operand.vmem [shape: f32[3,4,128], index: 1, kind: input, shape index: {}]   ;;  %s643_s2 = inlined_call_operand.hbm [shape: f32[2,8,128], index: 2, kind: output, shape index: {}]  }
   0x1   :  { %9 = vsyncpa [#allocation3 + $0x1], 0  ;;  %s535_s9 = smov 0   ;;  %s537_s10 = smov 0  }
   0x2   :  { %s539_s11 = smov 0   ;;  %s541_s12 = smov 0  }
   0x3   :  { %s543_s13 = smov 0   ;;  %s545_s14 = smov 0  }
   0x4 LB: > { %s363_s15 = sadd.s32 4294967295, %s518_s14   ;;  %s364_s16 = sadd.s32 4294967294, %s518_s14   ;;  %s518_s14 = sphi %s545_s14, %s15_s14   ;;  %s514_s13 = sphi %s543_s13, %s650_s13   ;;  %s510_s12 = sphi %s541_s12, %s649_s12   ;;  %s506_s11 = sphi %s539_s11, %s648_s11   ;;  %s502_s10 = sphi %s537_s10, %s647_s10   ;;  %s498_s9 = sphi %s535_s9, %s646_s9  }
   0x5   : > { %s24_s17 = sadd.s32 1, %s514_s13  ;;  %s88_s18 = sadd.s32 1, %s506_s11 }
   0x6   : > { %p25_p0 = scmp.ge.s32.totalorder %s24_s17, 2  ;;  %p98_p1 = scmp.ne.s32.totalorder %s506_s11, %s502_s10 }
   0x7   : > { %p99_p2 = scmp.eq.s32.totalorder %s363_s15, 1  ;;  %p104_p3 = scmp.ne.s32.totalorder %s502_s10, %s498_s9 }
   0x8   : > { %s652_s17 = smov (%p25_p0, %s24_s17), 0  ;;  %p105_p5 = scmp.eq.s32.totalorder %s364_s16, 1 }
   0x9   : > { %p575_p4 = por %p99_p2, %p98_p1  ;;  %s83_s20 = ssub.s32 %s514_s13, %s652_s17 }
   0xa   : > { %p368_p6 = scmp.ge.s32.totalorder %s518_s14, 1  ;;  %p86_p7 = scmp.eq.s32.totalorder %s83_s20, 0 }
   0xb   : > { %p582_p8 = por %p105_p5, %p104_p3  ;;  %p138_p9 = scmp.lt.s32.totalorder %s518_s14, 3 }
   0xc   : > { %s588_s22 = scalar_select %p86_p7, %s506_s11, %s88_s18  }
   0xd   : > { %p139_p10 = pnand %p368_p6, %p138_p9 }
   0xe   : > { %p164_p11 = scmp.lt.s32.totalorder (!%p139_p10), %s510_s12, 1  ;;  %s161_s6 = sand.u32 (!%p139_p10), 1, %s502_s10  }
   0xf   : > { %142 = sbr.rel (%p139_p10) target bundleno = 162 (0xa2), region = 28  ;;  %s369_s7 = sshll.u32 (!%p139_p10), %s161_s6, 3 }
  0x10   : > { %s381_s8 = sshll.u32 (!%p139_p10), %s510_s12, 3  ;;  %s163_s20 = scalar_lea.vmem (!%p139_p10), [#allocation2], %s369_s7 }
  0x11   : > { %s275_s18 = scalar_lea.hbm (!%p139_p10), %s643_s2, %s381_s8  ;;  %s277_s23 = sshll.u32 (!%p139_p10), %s163_s20, 4  ;;  %s278_s23 = int_to_ptr.vmem [resolvable:$true] %s277_s23 }
  0x12   : > { %s279_s24 = sshll.u32 (!%p139_p10), %s275_s18, 4  ;;  %s264_s25 = scalar_lea.sflag (!%p139_p10), [#allocation3], %s161_s6  ;;  %s280_s24 = int_to_ptr.hbm [resolvable:$true] %s279_s24 }
  0x13   : > { %s454_s26 = sshra.s32 (!%p139_p10), %s280_s24, 4  ;;  %s455_s26 = int_to_ptr.hbm [resolvable:$true] %s454_s26 }
  0x14   : > { %vm182_vm0 = vcmask 1043456   ;;  %v377_v0 = vld [vmem:[%s642_s1 + $0x8] sm:$0xf]  ;;  %v372_v1 = vld [vmem:[%s642_s1 + $0x4] sm:$0xf]  ;;  %s165_s29 = scalar_select %p164_p11, %s510_s12, 1 }
  0x15   : > { %378 = vmatpush.msk.msra.mxu2 %vm182_vm0, %v377_v0  ;;  %v174_v2 = vld [vmem:[%s642_s1] sm:$0xf]  ;;  %373 = vmatpush.msk.msra.mxu0 %vm182_vm0, %v372_v1  ;;  %vm178_vm1 = vcmask 31744   ;;  %s456_s12 = scalar_lea.hbm %s455_s26, 8  ;;  %p461_p1 = scmp.lt.s32.totalorder %s455_s26, %s643_s2 }
  0x16   : > { %375 = vmatpush.msk.msra.mxu1 %vm182_vm0, %v174_v2  ;;  %s384_s30 = sshll.u32 %s165_s29, 4  ;;  %p457_p12 = scmp.ne.s32.totalorder %s455_s26, %s456_s12 }
  0x17   : > { %s168_s5 = scalar_lea.vmem %s641_s0, %s384_s30  ;;  %s460_s29 = scalar_lea.hbm %s643_s2, 16 }
  0x18   : > { %v232_v3 = vld [vmem:[%s168_s5 + $0x2] sm:$0xff]  ;;  %p458_p13 = pnand %p457_p12, %p575_p4  ;;  %p462_p2 = scmp.lt.s32.totalorder %s460_s29, %s456_s12 }
  0x19   : > { %v175_v4 = vld [vmem:[%s168_s5 + $0x1] sm:$0xff]  ;;  %379 = vmatmul.msk.f32.vlgmr.msra.gmra.mxu2 %vm178_vm1, %v232_v3 }
  0x1a   : > { %v173_v5 = vld [vmem:[%s168_s5] sm:$0xff]  ;;  %374 = vmatmul.msk.f32.vlgmr.msra.gmra.mxu0 %vm178_vm1, %v175_v4  ;;  %p459_p0 = pneg %p458_p13  ;;  %p463_p3 = por %p462_p2, %p461_p1 }
  0x1b   : > { %376 = vmatmul.msk.f32.vlgmr.msra.gmra.mxu1 %vm178_vm1, %v173_v5 }
  0x1c   : > { %p464_p5 = pnand %p463_p3, %p459_p0 }
  0x97   : > { %v203_v6 = vpop.f32.mrf.mxu0 }
  0x98   : > { %v229_v7 = vpop.f32.mrf.mxu1 }
  0x99   : > { %v230_v8 = vadd.f32 %v229_v7, %v203_v6 }
  0x9c   : > { %v258_v9 = vpop.f32.mrf.mxu2 }
  0x9d   : > { %v261_v10 = vadd.f32 %v258_v9, %v230_v8 }
  0x9f   : > { %262 = vst [vmem:[%s163_s20] sm:$0xff] %v261_v10 }
  0xa0   : > { %467 = shalt.err (!%p464_p5)
}
  0xa1   : > { %385 = dma.vmem_to_hbm [thread:$0]  (%p575_p4), %s278_s23, 128, %s280_s24, %s264_s25  }
  0xa2 PF: > { %p391_p6 = scmp.ge.s32.totalorder %s518_s14, 2  ;;  %s291_s4 = sand.u32 1, %s498_s9  }
  0xa3   : > { %s292_s5 = scalar_lea.sflag [#allocation3], %s291_s4 }
  0xa4   : > { %p388_p7 = pnand %p391_p6, %p582_p8 }
  0xa6   : > { %p389_p9 = pneg %p388_p7 }
  0xa8   : > { %493 = dma.done.wait (%p389_p9), %s292_s5, 128  }
  0xa9   : > { %495 = vsyncadd (%p389_p9), %s292_s5, 4294967168  ;;  %s15_s14 = sadd.s32 1, %s518_s14   ;;  %s646_s9 = smov %s502_s10 }
  0xaa   : > { %p12_p10 = scmp.ge.s32.totalorder %s15_s14, 4   ;;  %s647_s10 = smov %s506_s11 }
  0xab   : > { %s648_s11 = smov %s588_s22  ;;  %s649_s12 = smov %s514_s13 }
  0xac   : > { %s650_s13 = smov %s652_s17  ;;  %14 = sbr.rel (!%p12_p10) target bundleno = 4 (0x4), region = 68 }
  0xb1   :  { %298 = vsyncpa [#allocation3], 1 }
  0xb2   :  { %300 = vsyncpa [#allocation3 + $0x1], 1 }

</bundles_post_ra>
